<compile_context>
chip_gen: v6e
topology: v6e:2x2x1
jax: 0.10.0
libtpu: 0.0.40
codegen_flags: <defaults>
</compile_context>

<pallas_src>
import functools

import jax
import jax.numpy as jnp
from jax import lax
from jax.experimental import pallas as pl
from jax.experimental.pallas import tpu as pltpu

EPS = 1e-5


# ---------------------------------------------------------------------------
# In-kernel helpers
# ---------------------------------------------------------------------------
def _row_stats(x, c_real):
    """Single-pass channel moments with f32 accumulation.

    var = E[x^2] - mean^2 is clamped at 0 for robustness; for LN-scale data in
    f32 this matches the two-pass form well within 1e-5.
    """
    inv_c = jnp.float32(1.0 / c_real)
    s1 = jnp.sum(x, axis=-1, keepdims=True, dtype=jnp.float32)
    s2 = jnp.sum(x * x, axis=-1, keepdims=True, dtype=jnp.float32)
    mean = s1 * inv_c
    var = jnp.maximum(s2 * inv_c - mean * mean, jnp.float32(0.0))
    rstd = lax.rsqrt(var + jnp.float32(EPS))
    return mean, rstd


def _seasonal_ln_kernel(x_ref, gamma_ref, o_ref, *, c_real, compute_dtype):
    """Path A: whole (tb, L, C) slab per grid step."""
    x = x_ref[...].astype(compute_dtype)                  # no-op when dtypes match
    mean, rstd = _row_stats(x, c_real)
    z = (x - mean.astype(compute_dtype)) * rstd.astype(compute_dtype)

    # Seasonal correction: beta cancels exactly, gamma factors out:
    #   out = gamma * (z - mean_L(z))
    # (mean over the sequence axis accumulated in f32)
    z_bar = jnp.mean(z, axis=1, keepdims=True, dtype=jnp.float32).astype(compute_dtype)
    gamma = gamma_ref[...].astype(compute_dtype)          # (1, C)
    o_ref[...] = ((z - z_bar) * gamma[:, None, :]).astype(o_ref.dtype)


def _seasonal_ln_seq_tiled_kernel(x_ref, gamma_ref, o_ref, zsum_ref, *,
                                  c_real, l_total, seq_tile, compute_dtype):
    """Path B: L-tiled two-phase kernel for large L*C.

    Grid = (batch, phase, L-tile).  Phase 0 accumulates sum_L(z) into VMEM
    scratch; phase 1 recomputes z per tile and stores gamma * (z - mean_L(z)).
    Cost: x is read twice, output written once (only used when a whole row
    cannot fit in VMEM).
    """
    p = pl.program_id(1)
    l = pl.program_id(2)

    @pl.when((p == 0) & (l == 0))
    def _():
        zsum_ref[...] = jnp.zeros_like(zsum_ref)

    x = x_ref[...].astype(compute_dtype)                  # (1, tl, C)
    mean, rstd = _row_stats(x, c_real)
    z = (x - mean.astype(compute_dtype)) * rstd.astype(compute_dtype)

    @pl.when(p == 0)
    def _():
        # Mask rows past the real sequence length (ragged tail tile).
        row = l * seq_tile + lax.broadcasted_iota(jnp.int32, (1, seq_tile, 1), 1)
        zf = jnp.where(row < l_total, z.astype(jnp.float32), jnp.float32(0.0))
        zsum_ref[...] += jnp.sum(zf, axis=1, keepdims=True)

    @pl.when(p == 1)
    def _():
        gamma = gamma_ref[...].astype(compute_dtype)      # (1, C)
        z_bar = (zsum_ref[...] * jnp.float32(1.0 / l_total)).astype(compute_dtype)
        o_ref[...] = ((z - z_bar) * gamma[:, None, :]).astype(o_ref.dtype)


# ---------------------------------------------------------------------------
# Wrapper-side sizing helpers
# ---------------------------------------------------------------------------
def _vmem_capacity_bytes():
    try:
        return int(pltpu.get_tpu_info().vmem_capacity_bytes)
    except Exception:
        return 64 << 20  # conservative: the smallest generation (v7x)


def _choose_batch_tile(B, per_row_bytes, budget_bytes, target_steps=8):
    """Largest divisor of B that fits the budget AND keeps >= ~target_steps grid
    steps (pipeline overlap; v7x megacore needs >= 2, even preferred)."""
    tb = max(1, min(B, budget_bytes // max(per_row_bytes, 1)))
    tb = min(tb, max(1, B // min(B, target_steps)))
    while B % tb:
        tb -= 1
    if (B // tb) % 2:  # prefer an even number of steps (v7x 2-TC split)
        t = tb - 1
        while t >= 1:
            if B % t == 0 and (B // t) % 2 == 0:
                tb = t
                break
            t -= 1
    return tb


# ---------------------------------------------------------------------------
# Public entry point
# ---------------------------------------------------------------------------
def my_layernorm(x, gamma, beta=None, *, seq_tile=None):
    """Seasonal LayerNorm: LayerNorm(x) minus its mean over the sequence axis.

    x: (B, L, C); gamma, beta: (C,).  `beta` is accepted for API parity with
    nn.LayerNorm but cancels exactly in x_hat - mean_seq(x_hat), so it is never
    read.  `seq_tile` forces the L-tiled fallback (mainly for testing).
    """
    del beta
    B, L, C = x.shape
    out_dtype = x.dtype
    # bf16-native elementwise chain on bf16 inputs (reductions still f32).
    # TODO(synk): gate this off on v5e (no bf16 VPU) once chip-version query is
    # exposed; it stays numerically correct there, just not the fastest layout.
    compute_dtype = jnp.bfloat16 if x.dtype == jnp.bfloat16 else jnp.float32

    vmem_cap = _vmem_capacity_bytes()
    slab_budget = vmem_cap // 4          # ~16 MiB on v7x, ~32 MiB on v5e/v6e
    vmem_limit = (vmem_cap * 3) // 4     # headroom for compiler scratch

    in_sz = jnp.dtype(x.dtype).itemsize
    cd_sz = jnp.dtype(compute_dtype).itemsize
    # double-buffered input + output slabs + ~4 live compute-dtype temporaries
    per_elem = 2 * in_sz + 2 * in_sz + 4 * cd_sz
    per_row = L * C * per_elem

    gamma2 = gamma.reshape(1, C)

    if seq_tile is None and per_row <= slab_budget:
        # ---- Path A: whole (L, C) row(s) per grid step, grid over batch ----
        tb = _choose_batch_tile(B, per_row, slab_budget)
        kernel = functools.partial(_seasonal_ln_kernel, c_real=C,
                                   compute_dtype=compute_dtype)
        return pl.pallas_call(
            kernel,
            out_shape=jax.ShapeDtypeStruct((B, L, C), out_dtype),
            grid_spec=pltpu.PrefetchScalarGridSpec(
                num_scalar_prefetch=0,
                grid=(B // tb,),
                in_specs=[
                    pl.BlockSpec((tb, L, C), lambda b: (b, 0, 0)),
                    pl.BlockSpec((1, C), lambda b: (0, 0)),
                ],
                out_specs=pl.BlockSpec((tb, L, C), lambda b: (b, 0, 0)),
            ),
            compiler_params=pltpu.CompilerParams(
                dimension_semantics=("parallel",),
                vmem_limit_bytes=vmem_limit,
            ),
        )(x, gamma2)

    # ---- Path B: L-tiled two-phase fallback (whole row does not fit VMEM) ----
    if seq_tile is not None:
        tl = int(seq_tile)
    else:
        tl = max(8, (slab_budget // max(C * per_elem, 1)) // 8 * 8)
    tl = min(tl, max(8, (L // 8) * 8))
    # TODO(synk): add channel tiling if a single (8, C) slab still overflows VMEM.
    n_l = pl.cdiv(L, tl)

    kernel = functools.partial(_seasonal_ln_seq_tiled_kernel, c_real=C,
                               l_total=L, seq_tile=tl,
                               compute_dtype=compute_dtype)
    return pl.pallas_call(
        kernel,
        out_shape=jax.ShapeDtypeStruct((B, L, C), out_dtype),
        grid_spec=pltpu.PrefetchScalarGridSpec(
            num_scalar_prefetch=0,
            grid=(B, 2, n_l),
            in_specs=[
                pl.BlockSpec((1, tl, C), lambda b, p, l: (b, l, 0)),
                pl.BlockSpec((1, C), lambda b, p, l: (0, 0)),
            ],
            # Phase 0 parks the output window on block (b, 0); phase 1 walks it,
            # so every output block is written back exactly once (with phase-1 data).
            out_specs=pl.BlockSpec((1, tl, C), lambda b, p, l: (b, p * l, 0)),
            scratch_shapes=[pltpu.VMEM((1, 1, C), jnp.float32)],
        ),
        compiler_params=pltpu.CompilerParams(
            dimension_semantics=("parallel", "arbitrary", "arbitrary"),
            vmem_limit_bytes=vmem_limit,
        ),
    )(x, gamma2)


def my_layernorm_ref(x, gamma, beta):
    """Pure-JAX reference mirroring the PyTorch forward (with beta)."""
    x = x.astype(jnp.float32)
    mean_c = jnp.mean(x, axis=-1, keepdims=True)
    var_c = jnp.mean((x - mean_c) ** 2, axis=-1, keepdims=True)
    x_hat = (x - mean_c) * lax.rsqrt(var_c + EPS)
    x_hat = x_hat * gamma + beta
    bias = jnp.mean(x_hat, axis=1, keepdims=True)
    return x_hat - bias


if __name__ == "__main__":
    key = jax.random.PRNGKey(0)
    kx, kg, kb, kx2 = jax.random.split(key, 4)

    # Small shapes consistent with the module: (batch, seq_len, channels).
    B, L, C = 2, 8, 32
    x = jax.random.normal(kx, (B, L, C), dtype=jnp.float32)
    # Non-trivial affine params to exercise the gamma path and the exact beta
    # cancellation (nn.LayerNorm default init would be ones / zeros).
    gamma = 1.0 + 0.1 * jax.random.normal(kg, (C,), dtype=jnp.float32)
    beta = 0.1 * jax.random.normal(kb, (C,), dtype=jnp.float32)

    # Path A: whole-sequence slab per grid step.
    out = jax.block_until_ready(my_layernorm(x, gamma, beta))
    ref = my_layernorm_ref(x, gamma, beta)
    assert out.shape == (B, L, C)
    assert jnp.allclose(out, ref, atol=1e-5, rtol=1e-5), "path A mismatch"

    # Path B: sequence-tiled two-phase fallback (forced; ragged tail exercised).
    L2 = 20
    x2 = jax.random.normal(kx2, (B, L2, C), dtype=jnp.float32)
    out2 = jax.block_until_ready(my_layernorm(x2, gamma, beta, seq_tile=8))
    ref2 = my_layernorm_ref(x2, gamma, beta)
    assert out2.shape == (B, L2, C)
    assert jnp.allclose(out2, ref2, atol=1e-5, rtol=1e-5), "path B mismatch"

    print("KERNEL_OK")
</pallas_src>

<mosaic_0001>
module attributes {stable_mosaic.version = 11 : i64} {
  func.func @_seasonal_ln_kernel(%arg0: i32, %arg1: memref<1x8x32xf32, #tpu.memory_space<vmem>>, %arg2: memref<1x32xf32, #tpu.memory_space<vmem>>, %arg3: memref<1x8x32xf32, #tpu.memory_space<vmem>>) attributes {dimension_semantics = [#tpu.dimension_semantics<parallel>], iteration_bounds = array<i64: 2>, scalar_prefetch = 0 : i64, scratch_operands = 0 : i64, tpu.core_type = #tpu.core_type<tc>, window_params = [{transform_indices = @transform_0, window_bounds = array<i64: 1, 8, 32>}, {pipeline_mode = #tpu.pipeline_mode<synchronous>, transform_indices = @transform_1, window_bounds = array<i64: 1, 32>}, {transform_indices = @transform_2, window_bounds = array<i64: 1, 8, 32>}]} {
    %c0 = arith.constant 0 : index
    %c0_0 = arith.constant 0 : index
    %c0_1 = arith.constant 0 : index
    %0 = vector.load %arg1[%c0, %c0_0, %c0_1] : memref<1x8x32xf32, #tpu.memory_space<vmem>>, vector<1x8x32xf32>
    %cst = arith.constant dense<0.000000e+00> : vector<1x8xf32>
    %1 = vector.multi_reduction <add>, %0, %cst [2] : vector<1x8x32xf32> to vector<1x8xf32>
    %2 = vector.shape_cast %1 : vector<1x8xf32> to vector<1x8x1xf32>
    %3 = arith.mulf %0, %0 : vector<1x8x32xf32>
    %cst_2 = arith.constant dense<0.000000e+00> : vector<1x8xf32>
    %4 = vector.multi_reduction <add>, %3, %cst_2 [2] : vector<1x8x32xf32> to vector<1x8xf32>
    %5 = vector.shape_cast %4 : vector<1x8xf32> to vector<1x8x1xf32>
    %cst_3 = arith.constant 3.125000e-02 : f32
    %6 = vector.broadcast %cst_3 : f32 to vector<1x8x1xf32>
    %7 = arith.mulf %2, %6 : vector<1x8x1xf32>
    %cst_4 = arith.constant 3.125000e-02 : f32
    %8 = vector.broadcast %cst_4 : f32 to vector<1x8x1xf32>
    %9 = arith.mulf %5, %8 : vector<1x8x1xf32>
    %10 = arith.mulf %7, %7 : vector<1x8x1xf32>
    %11 = arith.subf %9, %10 : vector<1x8x1xf32>
    %cst_5 = arith.constant 0.000000e+00 : f32
    %12 = vector.broadcast %cst_5 : f32 to vector<1x8x1xf32>
    %13 = arith.maximumf %11, %12 : vector<1x8x1xf32>
    %cst_6 = arith.constant 9.99999974E-6 : f32
    %14 = vector.broadcast %cst_6 : f32 to vector<1x8x1xf32>
    %15 = arith.addf %13, %14 : vector<1x8x1xf32>
    %16 = math.rsqrt %15 : vector<1x8x1xf32>
    %17 = vector.broadcast %7 : vector<1x8x1xf32> to vector<1x8x32xf32>
    %18 = arith.subf %0, %17 : vector<1x8x32xf32>
    %19 = vector.broadcast %16 : vector<1x8x1xf32> to vector<1x8x32xf32>
    %20 = arith.mulf %18, %19 : vector<1x8x32xf32>
    %cst_7 = arith.constant dense<0.000000e+00> : vector<1x32xf32>
    %21 = vector.multi_reduction <add>, %20, %cst_7 [1] : vector<1x8x32xf32> to vector<1x32xf32>
    %22 = vector.shape_cast %21 : vector<1x32xf32> to vector<1x1x32xf32>
    %cst_8 = arith.constant 8.000000e+00 : f32
    %23 = vector.broadcast %cst_8 : f32 to vector<1x1x32xf32>
    %24 = arith.divf %22, %23 : vector<1x1x32xf32>
    %c0_9 = arith.constant 0 : index
    %c0_10 = arith.constant 0 : index
    %25 = vector.load %arg2[%c0_9, %c0_10] : memref<1x32xf32, #tpu.memory_space<vmem>>, vector<1x32xf32>
    %26 = vector.broadcast %24 : vector<1x1x32xf32> to vector<1x8x32xf32>
    %27 = arith.subf %20, %26 : vector<1x8x32xf32>
    %28 = vector.shape_cast %25 : vector<1x32xf32> to vector<1x1x32xf32>
    %29 = vector.broadcast %28 : vector<1x1x32xf32> to vector<1x8x32xf32>
    %30 = arith.mulf %27, %29 : vector<1x8x32xf32>
    %c0_11 = arith.constant 0 : index
    %c0_12 = arith.constant 0 : index
    %c0_13 = arith.constant 0 : index
    %31 = vector.load %arg3[%c0_11, %c0_12, %c0_13] : memref<1x8x32xf32, #tpu.memory_space<vmem>>, vector<1x8x32xf32>
    tpu.vector_store %arg3[%c0_11, %c0_12, %c0_13], %30 {strides = array<i32>} : memref<1x8x32xf32, #tpu.memory_space<vmem>>, vector<1x8x32xf32>,
    return
  }
  func.func @transform_0(%arg0: i32) -> (i32, i32, i32) {
    %c0_i32 = arith.constant 0 : i32
    %c0_i32_0 = arith.constant 0 : i32
    %c0_i32_1 = arith.constant 0 : i32
    return %arg0, %c0_i32, %c0_i32_0 : i32, i32, i32
  }
  func.func @transform_1(%arg0: i32) -> (i32, i32) {
    %c0_i32 = arith.constant 0 : i32
    %c0_i32_0 = arith.constant 0 : i32
    %c0_i32_1 = arith.constant 0 : i32
    return %c0_i32, %c0_i32_0 : i32, i32
  }
  func.func @transform_2(%arg0: i32) -> (i32, i32, i32) {
    %c0_i32 = arith.constant 0 : i32
    %c0_i32_0 = arith.constant 0 : i32
    %c0_i32_1 = arith.constant 0 : i32
    return %arg0, %c0_i32, %c0_i32_0 : i32, i32, i32
  }
}

</mosaic_0001>

<bundles_post_ra>
// kernel: tpu_custom_call.1
= control target key start
LH: loop header
LB: loop body
LE: loop exit
PB: predicated region body
PF: predicated region fallthrough
CT: control target
= control target key end

     0   :  { %7 = vsyncpa [#allocation3], 0  ;;  %s604_s0 = inlined_call_operand.hbm [shape: f32[2,8,32], index: 0, kind: input, shape index: {}]   ;;  %s605_s1 = inlined_call_operand.vmem [shape: f32[1,32], index: 1, kind: input, shape index: {}]   ;;  %s606_s2 = inlined_call_operand.hbm [shape: f32[2,8,32], index: 2, kind: output, shape index: {}]  }
   0x1   :  { %9 = vsyncpa [#allocation3 + $0x1], 0 }
   0x2   :  { %10 = vsyncpa [#allocation4], 0 }
   0x3   :  { %12 = vsyncpa [#allocation4 + $0x1], 0  ;;  %s452_s9 = smov 0   ;;  %s454_s10 = smov 0  }
   0x4   :  { %s456_s11 = smov 0   ;;  %s458_s12 = smov 0  }
   0x5 LB: > { %s473_s13 = sadd.s32 4294967295, %s433_s12   ;;  %s280_s14 = sadd.s32 4294967294, %s433_s12   ;;  %s433_s12 = sphi %s458_s12, %s623_s12   ;;  %s429_s11 = sphi %s456_s11, %s622_s11   ;;  %s425_s10 = sphi %s454_s10, %s621_s10   ;;  %s421_s9 = sphi %s452_s9, %s620_s9  }
   0x6   : > { %s477_s15 = sadd.s32 1, %s433_s12   ;;  %s25_s16 = sadd.s32 1, %s429_s11 }
   0x7   : > { %s22_s17 = ssub.s32 %s433_s12, %s477_s15  ;;  %p32_p0 = scmp.ne.s32.totalorder %s429_s11, %s425_s10 }
   0x8   : > { %p23_p1 = scmp.eq.s32.totalorder %s22_s17, 0  ;;  %p33_p2 = scmp.eq.s32.totalorder %s433_s12, 0 }
   0x9   : > { %p38_p3 = scmp.ne.s32.totalorder %s425_s10, %s421_s9  ;;  %p39_p4 = scmp.eq.s32.totalorder %s473_s13, 0 }
   0xa   : > { %s489_s18 = scalar_select %p23_p1, %s429_s11, %s25_s16  }
   0xb   : > { %p491_p5 = por %p33_p2, %p32_p0  ;;  %p495_p6 = por %p39_p4, %p38_p3 }
   0xc   : > { %p83_p7 = scmp.eq.s32.totalorder %s473_s13, 1  ;;  %p89_p8 = scmp.eq.s32.totalorder %s280_s14, 1 }
   0xd   : > { %s610_s20 = scalar_select %p495_p6, 1, 0 }
   0xe   : > { %p305_p10 = scmp.lt.s32.totalorder %s433_s12, 2  ;;  %p502_p11 = por %p83_p7, %p32_p0 }
   0xf   : > { %p506_p12 = por %p89_p8, %p38_p3  ;;  %s112_s23 = sand.u32 1, %s429_s11  }
  0x10   : > { %s611_s21 = scalar_select %p502_p11, 1, 0 }
  0x11   : > { %s612_s22 = scalar_select %p506_p12, 1, 0 }
  0x12   : > { %s284_s24 = sshll.u32 %s433_s12, 7  ;;  %s283_s25 = sshll.u32 %s112_s23, 3 }
  0x13   : > { %s515_s28 = scalar_lea.hbm %s604_s0, %s284_s24  ;;  %s116_s29 = scalar_lea.vmem [#allocation2], %s283_s25 }
  0x14   : > { %s123_s30 = sshll.u32 %s116_s29, 4  ;;  %p519_p13 = pnand %p305_p10, %p491_p5  ;;  %s523_s30 = int_to_ptr.vmem [resolvable:$true] %s123_s30 }
  0x15   : > { %s113_s4 = scalar_lea.sflag [#allocation3], %s112_s23  ;;  %s341_s5 = scalar_lea.hbm %s515_s28, 128 }
  0x16   : > { %p342_p2 = scmp.ne.s32.totalorder %s515_s28, %s341_s5  ;;  %p343_p3 = pneg %p519_p13 }
  0x17   : > { %s346_s8 = scalar_lea.hbm %s604_s0, 256  ;;  %p347_p5 = scmp.lt.s32.totalorder %s515_s28, %s604_s0 }
  0x18   : > { %p344_p4 = pnand %p343_p3, %p342_p2  ;;  %p348_p8 = scmp.lt.s32.totalorder %s346_s8, %s341_s5 }
  0x1a   : > { %p345_p7 = pneg %p344_p4  ;;  %p349_p10 = por %p348_p8, %p347_p5 }
  0x1c   : > { %p350_p9 = pnand %p349_p10, %p345_p7 }
  0x1e   : > { %353 = shalt.err (!%p350_p9)
}
  0x1f   : > { %s354_s17 = scalar_lea.vmem %s523_s30, 128  ;;  %s435_s19 = smov [#allocation2]  }
  0x20   : > { %p355_p0 = scmp.ne.s32.totalorder %s523_s30, %s354_s17  ;;  %s359_s23 = sshll.u32 %s435_s19, 4  ;;  %s360_s23 = int_to_ptr.vmem [resolvable:$false] %s359_s23 }
  0x21   : > { %s361_s24 = scalar_lea.vmem %s360_s23, 256  ;;  %p362_p4 = scmp.lt.s32.totalorder %s523_s30, %s360_s23 }
  0x22   : > { %p357_p1 = pnand %p355_p0, %p343_p3  ;;  %p363_p12 = scmp.lt.s32.totalorder %s361_s24, %s354_s17 }
  0x24   : > { %p358_p2 = pneg %p357_p1  ;;  %p364_p11 = por %p363_p12, %p362_p4 }
  0x26   : > { %p365_p6 = pnand %p364_p11, %p358_p2 }
  0x28   : > { %368 = shalt.err (!%p365_p6)
}
  0x29   : > { %300 = dma.hbm_to_vmem [thread:$0]  (!%p519_p13), %s515_s28, 128, %s523_s30, %s113_s4  }
  0x2a   : > { %p614_p9 = scmp.lt.s32.totalorder %s433_s12, 3  ;;  %p615_p7 = scmp.ge.s32.totalorder %s433_s12, 1 }
  0x2c   : > { %p129_p0 = pnand %p615_p7, %p614_p9 }
  0x2d   : > { %s550_s25 = sand.u32 (!%p129_p0), 1, %s425_s10   ;;  %p616_p6 = scmp.ne.s32.totalorder (!%p129_p0), %s610_s20, 0 }
  0x2e   : > { %132 = sbr.rel (%p129_p0) target bundleno = 252 (0xfc), region = 28  ;;  %s286_s26 = sshll.u32 (!%p129_p0), %s550_s25, 3 }
  0x2f   : > { %s135_s27 = scalar_lea.sflag (!%p129_p0), [#allocation3], %s550_s25  ;;  %s138_s29 = scalar_lea.vmem (!%p129_p0), [#allocation2], %s286_s26 }
  0x33   : > { %412 = dma.done.wait (%p616_p6), %s135_s27, 128  }
  0x34   : > { %414 = vsyncadd (%p616_p6), %s135_s27, 4294967168  ;;  %vm160_vm0 = vcmask 261120   ;;  %v159_v0 = vld [vmem:[%s138_s29] sm:$0xff]  ;;  %s290_s30 = sshll.u32 %s473_s13, 7  ;;  %s158_s3 = scalar_lea.vmem [#allocation5], %s286_s26 }
  0x35   : > { %v161_v1 = vsel %vm160_vm0, %v159_v0, 0.0  ;;  %v164_v2 = vmul.f32 %v159_v0, %v159_v0  ;;  %v288_v23 = vld [vmem:[%s605_s1] ss:$0 sm:$0xff]  ;;  %s210_s4 = sshll.u32 %s158_s3, 4  ;;  %s208_s7 = scalar_lea.hbm %s606_s2, %s290_s30  ;;  %s211_s4 = int_to_ptr.vmem [resolvable:$true] %s210_s4 }
  0x36   : > { %162 = vadd.xlane.f32.xlu0 %v161_v1  ;;  %s197_s8 = scalar_lea.sflag [#allocation4], %s550_s25  ;;  %s369_s14 = scalar_lea.vmem %s211_s4, 128 }
  0x37   : > { %v165_v3 = vsel %vm160_vm0, %v164_v2, 0.0  ;;  %p370_p11 = scmp.ne.s32.totalorder %s211_s4, %s369_s14  ;;  %p617_p12 = scmp.ne.s32.totalorder %s611_s21, 0 }
  0x38   : > { %s436_s16 = smov [#allocation5]  }
  0x39   : > { %p371_p13 = pnand %p370_p11, %p617_p12  ;;  %s373_s13 = sshll.u32 %s436_s16, 4  ;;  %s374_s13 = int_to_ptr.vmem [resolvable:$false] %s373_s13 }
  0x3a   : > { %166 = vadd.xlane.f32.xlu0 %v165_v3  ;;  %s375_s17 = scalar_lea.vmem %s374_s13, 256  ;;  %p376_p3 = scmp.lt.s32.totalorder %s211_s4, %s374_s13 }
  0x3b   : > { %p372_p1 = pneg %p371_p13  ;;  %p377_p5 = scmp.lt.s32.totalorder %s375_s17, %s369_s14 }
  0x3d   : > { %p378_p8 = por %p377_p5, %p376_p3 }
  0x3f   : > { %p379_p10 = pnand %p378_p8, %p372_p1 }
  0xbf   : > { %v163_v4 = vpop.xlane.xlu0 %162 }
  0xc0   : > { %v168_v5 = vmul.f32 0.03125, %v163_v4 }
  0xc2   : > { %v170_v7 = vmul.f32 %v168_v5, %v168_v5  ;;  %v175_v12 = vsub.f32 %v159_v0, %v168_v5 }
  0xc3   : > { %v167_v6 = vpop.xlane.xlu0 %166 }
  0xc4   : > { %v169_v8 = vmul.f32 0.03125, %v167_v6 }
  0xc6   : > { %v171_v9 = vsub.f32 %v169_v8, %v170_v7 }
  0xc8   : > { %v172_v10 = vmax.f32 %v171_v9, 0.0 }
  0xca   : > { %v173_v11 = vadd.f32 1e-05, %v172_v10 }
  0xcc   : > { %339 = vrsqrt.f32 %v173_v11 }
  0xd9   : > { %v340_v13 = vpop.eup %339 }
  0xda   : > { %v176_v14 = vmul.f32 %v340_v13, %v175_v12 }
  0xdc   : > { %v177_v15 = vsel %vm160_vm0, %v176_v14, 0.0 }
  0xdd   : > { %v178_v16 = vrot.slane %v177_v15, 4 }
  0xdf   : > { %v179_v17 = vadd.f32 %v178_v16, %v177_v15 }
  0xe1   : > { %v180_v18 = vrot.slane %v179_v17, 2 }
  0xe3   : > { %v181_v19 = vadd.f32 %v180_v18, %v179_v17 }
  0xe5   : > { %v182_v20 = vrot.slane %v181_v19, 1 }
  0xe7   : > { %v183_v21 = vadd.f32 %v182_v20, %v181_v19 }
  0xe9   : > { %v185_v22 = vmul.f32 0.125, %v183_v21 }
  0xeb   : > { %v187_v24 = vsub.f32 %v176_v14, %v185_v22 }
  0xed   : > { %v194_v25 = vmul.f32 %v288_v23, %v187_v24 }
  0xef   : > { %195 = vst.msk [vmem:[%s158_s3] sm:$0xff] %vm160_vm0, %v194_v25 }
  0xf0   : > { %382 = shalt.err (!%p379_p10)
}
  0xf1   : > { %s383_s19 = scalar_lea.hbm %s208_s7, 128  ;;  %s387_s25 = scalar_lea.hbm %s606_s2, 256 }
  0xf2   : > { %p384_p2 = scmp.ne.s32.totalorder %s208_s7, %s383_s19  ;;  %p388_p7 = scmp.lt.s32.totalorder %s208_s7, %s606_s2 }
  0xf3   : > { %p389_p0 = scmp.lt.s32.totalorder %s387_s25, %s383_s19 }
  0xf4   : > { %p385_p4 = pnand %p384_p2, %p617_p12 }
  0xf5   : > { %p390_p6 = por %p389_p0, %p388_p7 }
  0xf6   : > { %p386_p9 = pneg %p385_p4 }
  0xf8   : > { %p391_p11 = pnand %p390_p6, %p386_p9 }
  0xfa   : > { %394 = shalt.err (!%p391_p11)
}
  0xfb   : > { %295 = dma.vmem_to_hbm [thread:$0]  (%p617_p12), %s211_s4, 128, %s208_s7, %s197_s8  }
  0xfc PF: > { %s222_s29 = sand.u32 1, %s421_s9   ;;  %p618_p13 = scmp.ne.s32.totalorder %s612_s22, 0 }
  0xfd   : > { %p619_p1 = scmp.ge.s32.totalorder %s433_s12, 2  ;;  %s223_s20 = scalar_lea.sflag [#allocation4], %s222_s29 }
  0xff   : > { %p302_p3 = pnand %p619_p1, %p618_p13 }
 0x101   : > { %p303_p5 = pneg %p302_p3 }
 0x103   : > { %416 = dma.done.wait (%p303_p5), %s223_s20, 128  }
 0x104   : > { %418 = vsyncadd (%p303_p5), %s223_s20, 4294967168  ;;  %p15_p8 = scmp.ge.s32.totalorder %s477_s15, 4   ;;  %s620_s9 = smov %s425_s10 }
 0x105   : > { %s621_s10 = smov %s429_s11  ;;  %s622_s11 = smov %s489_s18 }
 0x106   : > { %s623_s12 = smov %s477_s15  ;;  %17 = sbr.rel (!%p15_p8) target bundleno = 5 (0x5), region = 73 }
 0x10b   :  { %228 = vsyncpa [#allocation3], 1 }
 0x10c   :  { %230 = vsyncpa [#allocation3 + $0x1], 1 }
 0x10d   :  { %231 = vsyncpa [#allocation4], 1 }
 0x10e   :  { %233 = vsyncpa [#allocation4 + $0x1], 1 }

</bundles_post_ra>
